<compile_context>
chip_gen: v7x
topology: tpu7x:2x2x1
jax: 0.10.0
libtpu: 0.0.40
codegen_flags: <defaults>
</compile_context>

<pallas_src>
import functools

import jax
import jax.numpy as jnp
from jax import lax
from jax.experimental import pallas as pl
from jax.experimental.pallas import tpu as pltpu

LANE = 128       # TPU lane width (last dim)
SUBLANE = 8      # TPU sublane width for f32 (second-to-last dim)
_MAX_TILE = 2048  # batch-rows per grid step cap (mem-bound; ~1 MiB f32 x slab)


def _round_up(n, m):
    return ((n + m - 1) // m) * m


def _cdiv(a, b):
    return -(-a // b)


def _vmem_capacity_bytes():
    try:
        return int(pltpu.get_tpu_info().vmem_capacity_bytes)
    except Exception:
        return 128 << 20      # v5e/v6e physical VMEM; conservative fallback


def _num_tensorcores():
    """Heuristic TC-per-chip count (v7x exposes 2 TCs sharing the grid)."""
    try:
        kind = jax.devices()[0].device_kind.lower()
        return 2 if "v7" in kind else 1
    except Exception:
        return 1


# --------------------------------------------------------------------------- #
# Kernel
# --------------------------------------------------------------------------- #
def _encoder_kernel(num_hidden, emb, *refs):
    """Fused MLP encoder kernel.

    refs layout:
      [x_ref,                            # [batch_tile, data_dim] (input dtype)
       w0, b0, ..., w_{L-1}, b_{L-1},    # compress layers (Linear + ReLU)
       w_head, b_head,                   # fused [mu | logvar | logvar] head
       out_ref]                          # [batch_tile, out_pad]: mu|logvar|std|0
    """
    n_in = 1 + 2 * num_hidden + 2
    in_refs = refs[:n_in]
    out_ref = refs[n_in]

    h = in_refs[0][...]
    # Hidden stack: Linear -> ReLU.  Matmuls in the weight dtype (f32 or bf16),
    # accumulation and elementwise math in f32 (VPU/EUP-friendly on all chips).
    for layer in range(num_hidden):
        w = in_refs[1 + 2 * layer][...]
        b = in_refs[2 + 2 * layer][...]          # [1, dout_pad] f32, broadcast add
        acc = jnp.dot(h.astype(w.dtype), w, preferred_element_type=jnp.float32)
        h = jnp.maximum(acc + b, 0.0)

    # Fused head: one lane-dense matmul producing [mu | logvar | logvar | 0].
    w_head = in_refs[n_in - 2][...]
    b_head = in_refs[n_in - 1][...]
    head = jnp.dot(h.astype(w_head.dtype), w_head,
                   preferred_element_type=jnp.float32) + b_head

    # Lanes [2*emb, 3*emb) hold a copy of logvar -> turn them into std.
    # Mask the exponent *input* so huge mu values never produce inf in the
    # discarded branch of the select.
    lane = lax.broadcasted_iota(jnp.int32, head.shape, 1)
    std_zone = (lane >= 2 * emb) & (lane < 3 * emb)
    exp_arg = jnp.where(std_zone, 0.5 * head, 0.0)
    out_ref[...] = jnp.where(std_zone, jnp.exp(exp_arg), head).astype(out_ref.dtype)


# --------------------------------------------------------------------------- #
# Parameter prep: pad feature dims to lane width, fuse the two heads
# --------------------------------------------------------------------------- #
def prepare_encoder_params(params, mxu_dtype=jnp.float32):
    """Pad feature dims to 128 lanes, fuse mu/logvar(+std band) into one head.

    `params` is the dict from `init_encoder_params` (weights [in, out],
    biases [1, out]).  The layer-0 input dim (K = data_dim) is left UNPADDED so
    the streamed x operand stays at its natural width.
    """
    emb = params["mu"][0].shape[1]
    prepped = {"hidden": [], "emb": emb}

    first = True
    for (w, b) in params["hidden"]:
        din, dout = w.shape
        din_p = din if first else _round_up(din, LANE)
        dout_p = _round_up(dout, LANE)
        w_p = jnp.zeros((din_p, dout_p), mxu_dtype).at[:din, :dout].set(
            w.astype(mxu_dtype))
        b_p = jnp.zeros((1, dout_p), jnp.float32).at[:, :dout].set(b)
        prepped["hidden"].append((w_p, b_p))
        first = False

    w_mu, b_mu = params["mu"]
    w_lv, b_lv = params["logvar"]
    din = w_mu.shape[0]
    din_p = din if first else _round_up(din, LANE)
    out_p = _round_up(3 * emb, LANE)

    w_head = jnp.zeros((din_p, out_p), mxu_dtype)
    w_head = w_head.at[:din, 0:emb].set(w_mu.astype(mxu_dtype))
    w_head = w_head.at[:din, emb:2 * emb].set(w_lv.astype(mxu_dtype))
    w_head = w_head.at[:din, 2 * emb:3 * emb].set(w_lv.astype(mxu_dtype))  # std band
    b_head = jnp.zeros((1, out_p), jnp.float32)
    b_head = b_head.at[:, 0:emb].set(b_mu)
    b_head = b_head.at[:, emb:2 * emb].set(b_lv)
    b_head = b_head.at[:, 2 * emb:3 * emb].set(b_lv)
    prepped["head"] = (w_head, b_head)
    return prepped


# --------------------------------------------------------------------------- #
# Tile choice (TC-aware, mem-bound heuristics)
# --------------------------------------------------------------------------- #
def _choose_batch_tile(B, num_tc):
    B8 = _round_up(B, SUBLANE)
    if B8 <= _MAX_TILE:
        # Fits one tile.  Only split if >=2 TensorCores can each get a decent
        # MXU M (>=256 rows); otherwise splitting a mem-bound kernel just adds
        # the ~0.35 us per-step overhead (pure loss on 1-TC v5e/v6e).
        if num_tc >= 2 and B8 >= 512:
            return _round_up(_cdiv(B8, 2), SUBLANE)
        return B8
    # Large batch: ~2048-row, 256-aligned tiles (good M for the 2x256^2 MXUs);
    # on 2-TC chips keep an even step count so neither core idles on the tail.
    n_steps = _cdiv(B8, _MAX_TILE)
    if num_tc >= 2 and n_steps % num_tc:
        n_steps = _round_up(n_steps, num_tc)
    return min(_MAX_TILE, _round_up(_cdiv(B8, n_steps), 256))


# --------------------------------------------------------------------------- #
# Wrapper
# --------------------------------------------------------------------------- #
def encoder_forward(x, prepped, *, batch_tile=None, out_dtype=jnp.float32):
    """Run the fused Encoder forward pass as a single Pallas kernel.

    Args:
      x: [B, data_dim] float32 (unpadded; streamed as-is).
      prepped: output of `prepare_encoder_params`.
      batch_tile: rows per grid step (clamped to round_up(B, 8)).
      out_dtype: dtype of the fused output slab (f32 default, bf16 halves
        writeback when downstream tolerates it).
    Returns:
      (mu, std, logvar), each [B, embedding_dim] in `out_dtype`.
    """
    B, data_dim = x.shape
    hidden = prepped["hidden"]
    w_head, b_head = prepped["head"]
    emb = prepped["emb"]

    din0 = hidden[0][0].shape[0] if hidden else w_head.shape[0]
    out_p = w_head.shape[1]
    assert data_dim == din0, "x feature dim must match layer-0 weight K"

    num_tc = _num_tensorcores()
    if batch_tile is None:
        batch_tile = _choose_batch_tile(B, num_tc)
    # Guard: never do redundant work on zero rows; keep sublane alignment.
    batch_tile = max(SUBLANE,
                     min(_round_up(batch_tile, SUBLANE), _round_up(B, SUBLANE)))

    n_steps = _cdiv(B, batch_tile)
    B_p = n_steps * batch_tile

    # Only rows are padded (zero rows), never lanes; no dtype cast here -- x is
    # the per-step streamed operand, keep its HBM traffic minimal.
    x_p = jnp.pad(x, ((0, B_p - B), (0, 0))) if B_p != B else x

    weight_ops = []
    for (w, b) in hidden:
        weight_ops += [w, b]
    weight_ops += [w_head, b_head]

    vmem_cap = _vmem_capacity_bytes()
    kernel = functools.partial(_encoder_kernel, len(hidden), emb)
    out_shape = jax.ShapeDtypeStruct((B_p, out_p), out_dtype)
    out_spec = pl.BlockSpec((batch_tile, out_p), lambda i: (i, 0))

    def _call(single_buffer):
        in_specs = [pl.BlockSpec((batch_tile, data_dim), lambda i: (i, 0))]
        for op in weight_ops:
            if single_buffer:
                # Grid-invariant operands: one resident buffer, no re-DMA.
                in_specs.append(pl.BlockSpec(op.shape, lambda i: (0, 0),
                                             pipeline_mode=pl.Buffered(1)))
            else:
                in_specs.append(pl.BlockSpec(op.shape, lambda i: (0, 0)))

        # VMEM budget: (single- or double-buffered) resident weights +
        # double-buffered x / out tiles, with margin; clamped to this
        # generation's capacity minus ~8 MiB Mosaic scratch headroom.
        w_mult = 1 if single_buffer else 2
        weight_bytes = sum(int(op.size) * op.dtype.itemsize for op in weight_ops)
        io_bytes = batch_tile * (data_dim * x.dtype.itemsize
                                 + out_p * jnp.dtype(out_dtype).itemsize)
        need = int((w_mult * weight_bytes + 2 * io_bytes) * 1.25) + (2 << 20)
        vmem_bytes = max(8 << 20, min(need, vmem_cap - (8 << 20)))

        return pl.pallas_call(
            kernel,
            out_shape=out_shape,
            grid_spec=pltpu.PrefetchScalarGridSpec(
                num_scalar_prefetch=0,
                grid=(n_steps,),
                in_specs=in_specs,
                out_specs=out_spec,
            ),
            compiler_params=pltpu.CompilerParams(
                dimension_semantics=("parallel",),
                vmem_limit_bytes=vmem_bytes),
        )(x_p, *weight_ops)

    try:
        out = _call(single_buffer=True)
    except Exception:
        # pipeline_mode=pl.Buffered(1) not supported on this jax build;
        # fall back to default double-buffered resident weights.
        out = _call(single_buffer=False)

    mu = out[:B, :emb]
    logvar = out[:B, emb:2 * emb]
    std = out[:B, 2 * emb:3 * emb]
    return mu, std, logvar


# --------------------------------------------------------------------------- #
# Parameter init (torch.nn.Linear-compatible shapes) and pure-JAX reference
# --------------------------------------------------------------------------- #
def init_encoder_params(key, data_dim, compress_dims, embedding_dim):
    """Deterministic synthetic parameter init (shapes match torch.nn.Linear)."""
    params = {"hidden": []}
    dim = data_dim
    for item in compress_dims:
        key, kw, kb = jax.random.split(key, 3)
        bound = 1.0 / jnp.sqrt(dim)
        # Stored as [in, out] (transposed relative to torch's [out, in]).
        w = jax.random.uniform(kw, (dim, item), jnp.float32, -bound, bound)
        b = jax.random.uniform(kb, (1, item), jnp.float32, -bound, bound)
        params["hidden"].append((w, b))
        dim = item
    for name in ("mu", "logvar"):
        key, kw, kb = jax.random.split(key, 3)
        bound = 1.0 / jnp.sqrt(dim)
        w = jax.random.uniform(kw, (dim, embedding_dim), jnp.float32, -bound, bound)
        b = jax.random.uniform(kb, (1, embedding_dim), jnp.float32, -bound, bound)
        params[name] = (w, b)
    return params


def encoder_ref(x, params):
    """Pure-JAX reference for correctness checking."""
    h = x
    for (w, b) in params["hidden"]:
        h = jnp.maximum(h @ w + b, 0.0)
    mu = h @ params["mu"][0] + params["mu"][1]
    logvar = h @ params["logvar"][0] + params["logvar"][1]
    return mu, jnp.exp(0.5 * logvar), logvar


if __name__ == "__main__":
    # Small, module-consistent shapes: tabular data_dim, two compress layers, emb dim.
    batch = 16
    data_dim = 32
    compress_dims = (64, 32)
    embedding_dim = 16

    key = jax.random.PRNGKey(0)
    key, kx = jax.random.split(key)
    x = jax.random.normal(kx, (batch, data_dim), jnp.float32)
    params = init_encoder_params(key, data_dim, compress_dims, embedding_dim)
    mu_r, std_r, logvar_r = encoder_ref(x, params)

    # --- f32 MXU path, default (grid=1, no split for a batch this small) -----
    prepped_f32 = prepare_encoder_params(params, mxu_dtype=jnp.float32)
    mu, std, logvar = encoder_forward(x, prepped_f32)
    jax.block_until_ready((mu, std, logvar))
    assert jnp.allclose(mu, mu_r, atol=1e-5, rtol=1e-5)
    assert jnp.allclose(std, std_r, atol=1e-5, rtol=1e-5)
    assert jnp.allclose(logvar, logvar_r, atol=1e-5, rtol=1e-5)

    # --- multi-step grid + row-padding path (B not a multiple of the tile) ---
    batch2 = 300
    key, kx2 = jax.random.split(key)
    x2 = jax.random.normal(kx2, (batch2, data_dim), jnp.float32)
    mu2_r, std2_r, logvar2_r = encoder_ref(x2, params)
    mu2, std2, logvar2 = encoder_forward(x2, prepped_f32, batch_tile=128)
    jax.block_until_ready((mu2, std2, logvar2))
    assert jnp.allclose(mu2, mu2_r, atol=1e-5, rtol=1e-5)
    assert jnp.allclose(std2, std2_r, atol=1e-5, rtol=1e-5)
    assert jnp.allclose(logvar2, logvar2_r, atol=1e-5, rtol=1e-5)

    # --- bf16 MXU weights + bf16 output slab (inference path); x stays f32 ---
    prepped_bf16 = prepare_encoder_params(params, mxu_dtype=jnp.bfloat16)
    mu_b, std_b, logvar_b = encoder_forward(x, prepped_bf16, out_dtype=jnp.bfloat16)
    jax.block_until_ready((mu_b, std_b, logvar_b))
    assert jnp.allclose(mu_b.astype(jnp.float32), mu_r, atol=5e-2, rtol=5e-2)
    assert jnp.allclose(std_b.astype(jnp.float32), std_r, atol=5e-2, rtol=5e-2)
    assert jnp.allclose(logvar_b.astype(jnp.float32), logvar_r, atol=5e-2, rtol=5e-2)

    print("KERNEL_OK")
</pallas_src>

<mosaic_0001>
module attributes {stable_mosaic.version = 11 : i64} {
  func.func @_encoder_kernel(%arg0: i32, %arg1: memref<16x32xf32, #tpu.memory_space<vmem>>, %arg2: memref<32x128xf32, #tpu.memory_space<vmem>>, %arg3: memref<1x128xf32, #tpu.memory_space<vmem>>, %arg4: memref<128x128xf32, #tpu.memory_space<vmem>>, %arg5: memref<1x128xf32, #tpu.memory_space<vmem>>, %arg6: memref<128x128xf32, #tpu.memory_space<vmem>>, %arg7: memref<1x128xf32, #tpu.memory_space<vmem>>, %arg8: memref<16x128xf32, #tpu.memory_space<vmem>>) attributes {dimension_semantics = [#tpu.dimension_semantics<parallel>], iteration_bounds = array<i64: 1>, scalar_prefetch = 0 : i64, scratch_operands = 0 : i64, tpu.core_type = #tpu.core_type<tc>, window_params = [{transform_indices = @transform_0, window_bounds = array<i64: 16, 32>}, {pipeline_mode = #tpu.pipeline_mode<synchronous>, transform_indices = @transform_1, window_bounds = array<i64: 32, 128>}, {pipeline_mode = #tpu.pipeline_mode<synchronous>, transform_indices = @transform_2, window_bounds = array<i64: 1, 128>}, {pipeline_mode = #tpu.pipeline_mode<synchronous>, transform_indices = @transform_3, window_bounds = array<i64: 128, 128>}, {pipeline_mode = #tpu.pipeline_mode<synchronous>, transform_indices = @transform_4, window_bounds = array<i64: 1, 128>}, {pipeline_mode = #tpu.pipeline_mode<synchronous>, transform_indices = @transform_5, window_bounds = array<i64: 128, 128>}, {pipeline_mode = #tpu.pipeline_mode<synchronous>, transform_indices = @transform_6, window_bounds = array<i64: 1, 128>}, {transform_indices = @transform_7, window_bounds = array<i64: 16, 128>}]} {
    %c0 = arith.constant 0 : index
    %c0_0 = arith.constant 0 : index
    %0 = vector.load %arg1[%c0, %c0_0] : memref<16x32xf32, #tpu.memory_space<vmem>>, vector<16x32xf32>
    %c0_1 = arith.constant 0 : index
    %c0_2 = arith.constant 0 : index
    %1 = vector.load %arg2[%c0_1, %c0_2] : memref<32x128xf32, #tpu.memory_space<vmem>>, vector<32x128xf32>
    %c0_3 = arith.constant 0 : index
    %c0_4 = arith.constant 0 : index
    %2 = vector.load %arg3[%c0_3, %c0_4] : memref<1x128xf32, #tpu.memory_space<vmem>>, vector<1x128xf32>
    %cst = arith.constant dense<0.000000e+00> : vector<16x128xf32>
    %3 = tpu.matmul %0, %1, %cst {dimension_numbers = #tpu.dot_dimension_numbers<[1], [0], [0], [1], [0, 0, 1, 1], [], []>} : vector<16x32xf32>, vector<32x128xf32>, vector<16x128xf32> -> vector<16x128xf32>
    %4 = vector.broadcast %2 : vector<1x128xf32> to vector<16x128xf32>
    %5 = arith.addf %3, %4 : vector<16x128xf32>
    %cst_5 = arith.constant 0.000000e+00 : f32
    %6 = vector.broadcast %cst_5 : f32 to vector<16x128xf32>
    %7 = arith.maximumf %5, %6 : vector<16x128xf32>
    %c0_6 = arith.constant 0 : index
    %c0_7 = arith.constant 0 : index
    %8 = vector.load %arg4[%c0_6, %c0_7] : memref<128x128xf32, #tpu.memory_space<vmem>>, vector<128x128xf32>
    %c0_8 = arith.constant 0 : index
    %c0_9 = arith.constant 0 : index
    %9 = vector.load %arg5[%c0_8, %c0_9] : memref<1x128xf32, #tpu.memory_space<vmem>>, vector<1x128xf32>
    %cst_10 = arith.constant dense<0.000000e+00> : vector<16x128xf32>
    %10 = tpu.matmul %7, %8, %cst_10 {dimension_numbers = #tpu.dot_dimension_numbers<[1], [0], [0], [1], [0, 0, 1, 1], [], []>} : vector<16x128xf32>, vector<128x128xf32>, vector<16x128xf32> -> vector<16x128xf32>
    %11 = vector.broadcast %9 : vector<1x128xf32> to vector<16x128xf32>
    %12 = arith.addf %10, %11 : vector<16x128xf32>
    %cst_11 = arith.constant 0.000000e+00 : f32
    %13 = vector.broadcast %cst_11 : f32 to vector<16x128xf32>
    %14 = arith.maximumf %12, %13 : vector<16x128xf32>
    %c0_12 = arith.constant 0 : index
    %c0_13 = arith.constant 0 : index
    %15 = vector.load %arg6[%c0_12, %c0_13] : memref<128x128xf32, #tpu.memory_space<vmem>>, vector<128x128xf32>
    %c0_14 = arith.constant 0 : index
    %c0_15 = arith.constant 0 : index
    %16 = vector.load %arg7[%c0_14, %c0_15] : memref<1x128xf32, #tpu.memory_space<vmem>>, vector<1x128xf32>
    %cst_16 = arith.constant dense<0.000000e+00> : vector<16x128xf32>
    %17 = tpu.matmul %14, %15, %cst_16 {dimension_numbers = #tpu.dot_dimension_numbers<[1], [0], [0], [1], [0, 0, 1, 1], [], []>} : vector<16x128xf32>, vector<128x128xf32>, vector<16x128xf32> -> vector<16x128xf32>
    %18 = vector.broadcast %16 : vector<1x128xf32> to vector<16x128xf32>
    %19 = arith.addf %17, %18 : vector<16x128xf32>
    %20 = tpu.iota {dimensions = array<i32: 1>} : vector<16x128xi32>
    %c32_i32 = arith.constant 32 : i32
    %21 = vector.broadcast %c32_i32 : i32 to vector<16x128xi32>
    %22 = arith.cmpi sge, %20, %21 : vector<16x128xi32>
    %c48_i32 = arith.constant 48 : i32
    %23 = vector.broadcast %c48_i32 : i32 to vector<16x128xi32>
    %24 = arith.cmpi slt, %20, %23 : vector<16x128xi32>
    %25 = arith.andi %22, %24 : vector<16x128xi1>
    %cst_17 = arith.constant 5.000000e-01 : f32
    %26 = vector.broadcast %cst_17 : f32 to vector<16x128xf32>
    %27 = arith.mulf %26, %19 : vector<16x128xf32>
    %cst_18 = arith.constant 0.000000e+00 : f32
    %28 = vector.broadcast %cst_18 : f32 to vector<16x128xf32>
    %29 = arith.select %25, %27, %28 : vector<16x128xi1>, vector<16x128xf32>
    %30 = math.exp %29 : vector<16x128xf32>
    %31 = arith.select %25, %30, %19 : vector<16x128xi1>, vector<16x128xf32>
    %c0_19 = arith.constant 0 : index
    %c0_20 = arith.constant 0 : index
    %32 = vector.load %arg8[%c0_19, %c0_20] : memref<16x128xf32, #tpu.memory_space<vmem>>, vector<16x128xf32>
    tpu.vector_store %arg8[%c0_19, %c0_20], %31 {strides = array<i32>} : memref<16x128xf32, #tpu.memory_space<vmem>>, vector<16x128xf32>,
    return
  }
  func.func @transform_0(%arg0: i32) -> (i32, i32) {
    %c0_i32 = arith.constant 0 : i32
    %c0_i32_0 = arith.constant 0 : i32
    return %arg0, %c0_i32 : i32, i32
  }
  func.func @transform_1(%arg0: i32) -> (i32, i32) {
    %c0_i32 = arith.constant 0 : i32
    %c0_i32_0 = arith.constant 0 : i32
    %c0_i32_1 = arith.constant 0 : i32
    return %c0_i32, %c0_i32_0 : i32, i32
  }
  func.func @transform_2(%arg0: i32) -> (i32, i32) {
    %c0_i32 = arith.constant 0 : i32
    %c0_i32_0 = arith.constant 0 : i32
    %c0_i32_1 = arith.constant 0 : i32
    return %c0_i32, %c0_i32_0 : i32, i32
  }
  func.func @transform_3(%arg0: i32) -> (i32, i32) {
    %c0_i32 = arith.constant 0 : i32
    %c0_i32_0 = arith.constant 0 : i32
    %c0_i32_1 = arith.constant 0 : i32
    return %c0_i32, %c0_i32_0 : i32, i32
  }
  func.func @transform_4(%arg0: i32) -> (i32, i32) {
    %c0_i32 = arith.constant 0 : i32
    %c0_i32_0 = arith.constant 0 : i32
    %c0_i32_1 = arith.constant 0 : i32
    return %c0_i32, %c0_i32_0 : i32, i32
  }
  func.func @transform_5(%arg0: i32) -> (i32, i32) {
    %c0_i32 = arith.constant 0 : i32
    %c0_i32_0 = arith.constant 0 : i32
    %c0_i32_1 = arith.constant 0 : i32
    return %c0_i32, %c0_i32_0 : i32, i32
  }
  func.func @transform_6(%arg0: i32) -> (i32, i32) {
    %c0_i32 = arith.constant 0 : i32
    %c0_i32_0 = arith.constant 0 : i32
    %c0_i32_1 = arith.constant 0 : i32
    return %c0_i32, %c0_i32_0 : i32, i32
  }
  func.func @transform_7(%arg0: i32) -> (i32, i32) {
    %c0_i32 = arith.constant 0 : i32
    %c0_i32_0 = arith.constant 0 : i32
    return %arg0, %c0_i32 : i32, i32
  }
}

module attributes {stable_mosaic.version = 11 : i64} {
  func.func @_encoder_kernel(%arg0: i32, %arg1: memref<16x32xf32, #tpu.memory_space<vmem>>, %arg2: memref<32x128xf32, #tpu.memory_space<vmem>>, %arg3: memref<1x128xf32, #tpu.memory_space<vmem>>, %arg4: memref<128x128xf32, #tpu.memory_space<vmem>>, %arg5: memref<1x128xf32, #tpu.memory_space<vmem>>, %arg6: memref<128x128xf32, #tpu.memory_space<vmem>>, %arg7: memref<1x128xf32, #tpu.memory_space<vmem>>, %arg8: memref<16x128xf32, #tpu.memory_space<vmem>>) attributes {dimension_semantics = [#tpu.dimension_semantics<parallel>], iteration_bounds = array<i64: 1>, scalar_prefetch = 0 : i64, scratch_operands = 0 : i64, tpu.core_type = #tpu.core_type<tc>, window_params = [{transform_indices = @transform_0, window_bounds = array<i64: 16, 32>}, {pipeline_mode = #tpu.pipeline_mode<synchronous>, transform_indices = @transform_1, window_bounds = array<i64: 32, 128>}, {pipeline_mode = #tpu.pipeline_mode<synchronous>, transform_indices = @transform_2, window_bounds = array<i64: 1, 128>}, {pipeline_mode = #tpu.pipeline_mode<synchronous>, transform_indices = @transform_3, window_bounds = array<i64: 128, 128>}, {pipeline_mode = #tpu.pipeline_mode<synchronous>, transform_indices = @transform_4, window_bounds = array<i64: 1, 128>}, {pipeline_mode = #tpu.pipeline_mode<synchronous>, transform_indices = @transform_5, window_bounds = array<i64: 128, 128>}, {pipeline_mode = #tpu.pipeline_mode<synchronous>, transform_indices = @transform_6, window_bounds = array<i64: 1, 128>}, {transform_indices = @transform_7, window_bounds = array<i64: 16, 128>}]} {
    %c0 = arith.constant 0 : index
    %c0_0 = arith.constant 0 : index
    %0 = vector.load %arg1[%c0, %c0_0] : memref<16x32xf32, #tpu.memory_space<vmem>>, vector<16x32xf32>
    %c0_1 = arith.constant 0 : index
    %c0_2 = arith.constant 0 : index
    %1 = vector.load %arg2[%c0_1, %c0_2] : memref<32x128xf32, #tpu.memory_space<vmem>>, vector<32x128xf32>
    %c0_3 = arith.constant 0 : index
    %c0_4 = arith.constant 0 : index
    %2 = vector.load %arg3[%c0_3, %c0_4] : memref<1x128xf32, #tpu.memory_space<vmem>>, vector<1x128xf32>
    %cst = arith.constant dense<0.000000e+00> : vector<16x128xf32>
    %3 = tpu.matmul %0, %1, %cst {dimension_numbers = #tpu.dot_dimension_numbers<[1], [0], [0], [1], [0, 0, 1, 1], [], []>} : vector<16x32xf32>, vector<32x128xf32>, vector<16x128xf32> -> vector<16x128xf32>
    %4 = vector.broadcast %2 : vector<1x128xf32> to vector<16x128xf32>
    %5 = arith.addf %3, %4 : vector<16x128xf32>
    %cst_5 = arith.constant 0.000000e+00 : f32
    %6 = vector.broadcast %cst_5 : f32 to vector<16x128xf32>
    %7 = arith.maximumf %5, %6 : vector<16x128xf32>
    %c0_6 = arith.constant 0 : index
    %c0_7 = arith.constant 0 : index
    %8 = vector.load %arg4[%c0_6, %c0_7] : memref<128x128xf32, #tpu.memory_space<vmem>>, vector<128x128xf32>
    %c0_8 = arith.constant 0 : index
    %c0_9 = arith.constant 0 : index
    %9 = vector.load %arg5[%c0_8, %c0_9] : memref<1x128xf32, #tpu.memory_space<vmem>>, vector<1x128xf32>
    %cst_10 = arith.constant dense<0.000000e+00> : vector<16x128xf32>
    %10 = tpu.matmul %7, %8, %cst_10 {dimension_numbers = #tpu.dot_dimension_numbers<[1], [0], [0], [1], [0, 0, 1, 1], [], []>} : vector<16x128xf32>, vector<128x128xf32>, vector<16x128xf32> -> vector<16x128xf32>
    %11 = vector.broadcast %9 : vector<1x128xf32> to vector<16x128xf32>
    %12 = arith.addf %10, %11 : vector<16x128xf32>
    %cst_11 = arith.constant 0.000000e+00 : f32
    %13 = vector.broadcast %cst_11 : f32 to vector<16x128xf32>
    %14 = arith.maximumf %12, %13 : vector<16x128xf32>
    %c0_12 = arith.constant 0 : index
    %c0_13 = arith.constant 0 : index
    %15 = vector.load %arg6[%c0_12, %c0_13] : memref<128x128xf32, #tpu.memory_space<vmem>>, vector<128x128xf32>
    %c0_14 = arith.constant 0 : index
    %c0_15 = arith.constant 0 : index
    %16 = vector.load %arg7[%c0_14, %c0_15] : memref<1x128xf32, #tpu.memory_space<vmem>>, vector<1x128xf32>
    %cst_16 = arith.constant dense<0.000000e+00> : vector<16x128xf32>
    %17 = tpu.matmul %14, %15, %cst_16 {dimension_numbers = #tpu.dot_dimension_numbers<[1], [0], [0], [1], [0, 0, 1, 1], [], []>} : vector<16x128xf32>, vector<128x128xf32>, vector<16x128xf32> -> vector<16x128xf32>
    %18 = vector.broadcast %16 : vector<1x128xf32> to vector<16x128xf32>
    %19 = arith.addf %17, %18 : vector<16x128xf32>
    %20 = tpu.iota {dimensions = array<i32: 1>} : vector<16x128xi32>
    %c32_i32 = arith.constant 32 : i32
    %21 = vector.broadcast %c32_i32 : i32 to vector<16x128xi32>
    %22 = arith.cmpi sge, %20, %21 : vector<16x128xi32>
    %c48_i32 = arith.constant 48 : i32
    %23 = vector.broadcast %c48_i32 : i32 to vector<16x128xi32>
    %24 = arith.cmpi slt, %20, %23 : vector<16x128xi32>
    %25 = arith.andi %22, %24 : vector<16x128xi1>
    %cst_17 = arith.constant 5.000000e-01 : f32
    %26 = vector.broadcast %cst_17 : f32 to vector<16x128xf32>
    %27 = arith.mulf %26, %19 : vector<16x128xf32>
    %cst_18 = arith.constant 0.000000e+00 : f32
    %28 = vector.broadcast %cst_18 : f32 to vector<16x128xf32>
    %29 = arith.select %25, %27, %28 : vector<16x128xi1>, vector<16x128xf32>
    %30 = math.exp %29 : vector<16x128xf32>
    %31 = arith.select %25, %30, %19 : vector<16x128xi1>, vector<16x128xf32>
    %c0_19 = arith.constant 0 : index
    %c0_20 = arith.constant 0 : index
    %32 = vector.load %arg8[%c0_19, %c0_20] : memref<16x128xf32, #tpu.memory_space<vmem>>, vector<16x128xf32>
    tpu.vector_store %arg8[%c0_19, %c0_20], %31 {strides = array<i32>} : memref<16x128xf32, #tpu.memory_space<vmem>>, vector<16x128xf32>,
    return
  }
  func.func @transform_0(%arg0: i32) -> (i32, i32) {
    %c0_i32 = arith.constant 0 : i32
    %c0_i32_0 = arith.constant 0 : i32
    return %arg0, %c0_i32 : i32, i32
  }
  func.func @transform_1(%arg0: i32) -> (i32, i32) {
    %c0_i32 = arith.constant 0 : i32
    %c0_i32_0 = arith.constant 0 : i32
    %c0_i32_1 = arith.constant 0 : i32
    return %c0_i32, %c0_i32_0 : i32, i32
  }
  func.func @transform_2(%arg0: i32) -> (i32, i32) {
    %c0_i32 = arith.constant 0 : i32
    %c0_i32_0 = arith.constant 0 : i32
    %c0_i32_1 = arith.constant 0 : i32
    return %c0_i32, %c0_i32_0 : i32, i32
  }
  func.func @transform_3(%arg0: i32) -> (i32, i32) {
    %c0_i32 = arith.constant 0 : i32
    %c0_i32_0 = arith.constant 0 : i32
    %c0_i32_1 = arith.constant 0 : i32
    return %c0_i32, %c0_i32_0 : i32, i32
  }
  func.func @transform_4(%arg0: i32) -> (i32, i32) {
    %c0_i32 = arith.constant 0 : i32
    %c0_i32_0 = arith.constant 0 : i32
    %c0_i32_1 = arith.constant 0 : i32
    return %c0_i32, %c0_i32_0 : i32, i32
  }
  func.func @transform_5(%arg0: i32) -> (i32, i32) {
    %c0_i32 = arith.constant 0 : i32
    %c0_i32_0 = arith.constant 0 : i32
    %c0_i32_1 = arith.constant 0 : i32
    return %c0_i32, %c0_i32_0 : i32, i32
  }
  func.func @transform_6(%arg0: i32) -> (i32, i32) {
    %c0_i32 = arith.constant 0 : i32
    %c0_i32_0 = arith.constant 0 : i32
    %c0_i32_1 = arith.constant 0 : i32
    return %c0_i32, %c0_i32_0 : i32, i32
  }
  func.func @transform_7(%arg0: i32) -> (i32, i32) {
    %c0_i32 = arith.constant 0 : i32
    %c0_i32_0 = arith.constant 0 : i32
    return %arg0, %c0_i32 : i32, i32
  }
}

</mosaic_0001>

<bundles_post_ra>
// kernel: tpu_custom_call.1
= control target key start
LH: loop header
LB: loop body
LE: loop exit
PB: predicated region body
PF: predicated region fallthrough
CT: control target
= control target key end

     0   :  { %12 = vsyncpa [#allocation3], 0  ;;  %s901_s0 = inlined_call_operand.hbm [shape: f32[16,32], index: 0, kind: input, shape index: {}]   ;;  %s902_s1 = inlined_call_operand.hbm [shape: f32[32,128], index: 1, kind: input, shape index: {}]   ;;  %s903_s2 = inlined_call_operand.vmem [shape: f32[1,128], index: 2, kind: input, shape index: {}]   ;;  %s904_s3 = inlined_call_operand.hbm [shape: f32[128,128], index: 3, kind: input, shape index: {}]   ;;  %s905_s4 = inlined_call_operand.vmem [shape: f32[1,128], index: 4, kind: input, shape index: {}]   ;;  %s906_s5 = inlined_call_operand.hbm [shape: f32[128,128], index: 5, kind: input, shape index: {}]   ;;  %s907_s6 = inlined_call_operand.vmem [shape: f32[1,128], index: 6, kind: input, shape index: {}]   ;;  %s908_s7 = inlined_call_operand.hbm [shape: f32[16,128], index: 7, kind: output, shape index: {}]  }
   0x1   :  { %13 = vsyncpa [#allocation6], 0 }
   0x2   :  { %14 = vsyncpa [#allocation9], 0 }
   0x3   :  { %15 = vsyncpa [#allocation4], 0  ;;  %s742_s24 = smov [#allocation5]   ;;  %s743_s26 = smov [#allocation2]  }
   0x4   :  { %s33_s25 = sshll.u32 %s742_s24, 4  ;;  %s21_s27 = sshll.u32 %s743_s26, 4  ;;  %s34_s25 = int_to_ptr.vmem [resolvable:$true] %s33_s25  ;;  %s789_s27 = int_to_ptr.vmem [resolvable:$true] %s21_s27 }
   0x5   :  { %s624_s30 = scalar_lea.hbm %s902_s1, 512 }
   0x6   :  { %p625_p0 = scmp.ne.s32.totalorder %s902_s1, %s624_s30  ;;  %p628_p1 = scmp.lt.u32.totalorder %s624_s30, %s902_s1 }
   0x8   :  { %p630_p2 = pnand %p628_p1, %p625_p0 }
   0xa   :  { %633 = shalt.err (!%p630_p2)
}
   0xb   :  { %s634_s12 = scalar_lea.vmem %s34_s25, 512  ;;  %p639_p4 = scmp.lt.s32.totalorder %s34_s25, %s34_s25 }
   0xc   :  { %p635_p3 = scmp.ne.s32.totalorder %s34_s25, %s634_s12  ;;  %p640_p5 = scmp.lt.s32.totalorder %s634_s12, %s634_s12 }
   0xe   :  { %p641_p6 = por %p640_p5, %p639_p4 }
  0x10   :  { %p642_p7 = pnand %p641_p6, %p635_p3 }
  0x12   :  { %645 = shalt.err (!%p642_p7)
}
  0x13   :  { %s744_s13 = smov 128   ;;  %s745_s14 = smov 8  }
  0x14   :  { %39 = dma.hbm_to_vmem [thread:$0]  %s902_s1, 512, %s34_s25, [#allocation6], %s744_s13, %s744_s13, %s745_s14  }
  0x15   :  { %s646_s19 = scalar_lea.hbm %s901_s0, 256 }
  0x16   :  { %p647_p8 = scmp.ne.s32.totalorder %s901_s0, %s646_s19  ;;  %p650_p9 = scmp.lt.u32.totalorder %s646_s19, %s901_s0 }
  0x18   :  { %p652_p10 = pnand %p650_p9, %p647_p8 }
  0x1a   :  { %655 = shalt.err (!%p652_p10)
}
  0x1b   :  { %s656_s24 = scalar_lea.vmem %s789_s27, 256  ;;  %p661_p12 = scmp.lt.s32.totalorder %s789_s27, %s789_s27 }
  0x1c   :  { %p657_p11 = scmp.ne.s32.totalorder %s789_s27, %s656_s24  ;;  %p662_p13 = scmp.lt.s32.totalorder %s656_s24, %s656_s24 }
  0x1e   :  { %p663_p0 = por %p662_p13, %p661_p12 }
  0x20   :  { %p664_p1 = pnand %p663_p0, %p657_p11 }
  0x22   :  { %667 = shalt.err (!%p664_p1)
}
  0x23   :  { %27 = dma.hbm_to_vmem [thread:$0]  %s901_s0, 256, %s789_s27, [#allocation3], %s744_s13, %s744_s13, %s745_s14  }
  0x24   :  { %s746_s26 = smov [#allocation7]   ;;  %s747_s29 = smov [#allocation8]  }
  0x25   :  { %s47_s28 = sshll.u32 %s746_s26, 4  ;;  %s61_s30 = sshll.u32 %s747_s29, 4  ;;  %s48_s28 = int_to_ptr.vmem [resolvable:$true] %s47_s28  ;;  %s826_s30 = int_to_ptr.vmem [resolvable:$true] %s61_s30 }
  0x26   :  { %s668_s10 = scalar_lea.hbm %s904_s3, 2048 }
  0x27   :  { %p669_p2 = scmp.ne.s32.totalorder %s904_s3, %s668_s10  ;;  %p672_p3 = scmp.lt.u32.totalorder %s668_s10, %s904_s3 }
  0x29   :  { %p674_p4 = pnand %p672_p3, %p669_p2 }
  0x2b   :  { %677 = shalt.err (!%p674_p4)
}
  0x2c   :  { %s678_s0 = scalar_lea.vmem %s48_s28, 2048  ;;  %p683_p6 = scmp.lt.s32.totalorder %s48_s28, %s48_s28 }
  0x2d   :  { %p679_p5 = scmp.ne.s32.totalorder %s48_s28, %s678_s0  ;;  %p684_p7 = scmp.lt.s32.totalorder %s678_s0, %s678_s0 }
  0x2f   :  { %p685_p8 = por %p684_p7, %p683_p6 }
  0x31   :  { %p686_p9 = pnand %p685_p8, %p679_p5 }
  0x33   :  { %689 = shalt.err (!%p686_p9)
}
  0x34   :  { %53 = dma.hbm_to_vmem [thread:$0]  %s904_s3, 2048, %s48_s28, [#allocation6], %s744_s13, %s744_s13, %s745_s14  }
  0x35   :  { %s690_s20 = scalar_lea.hbm %s906_s5, 2048 }
  0x36   :  { %p691_p10 = scmp.ne.s32.totalorder %s906_s5, %s690_s20  ;;  %p694_p11 = scmp.lt.u32.totalorder %s690_s20, %s906_s5 }
  0x38   :  { %p696_p12 = pnand %p694_p11, %p691_p10 }
  0x3a   :  { %699 = shalt.err (!%p696_p12)
}
  0x3b   :  { %s700_s1 = scalar_lea.vmem %s826_s30, 2048  ;;  %p705_p0 = scmp.lt.s32.totalorder %s826_s30, %s826_s30 }
  0x3c   :  { %p701_p13 = scmp.ne.s32.totalorder %s826_s30, %s700_s1  ;;  %p706_p1 = scmp.lt.s32.totalorder %s700_s1, %s700_s1 }
  0x3e   :  { %p707_p2 = por %p706_p1, %p705_p0 }
  0x40   :  { %p708_p3 = pnand %p707_p2, %p701_p13 }
  0x42   :  { %711 = shalt.err (!%p708_p3)
}
  0x43   :  { %67 = dma.hbm_to_vmem [thread:$0]  %s906_s5, 2048, %s826_s30, [#allocation9], %s744_s13, %s744_s13, %s745_s14  }
  0x44   :  { %734 = dma.done.wait [#allocation3], 256  }
  0x45   :  { %735 = vsyncadd [#allocation3], 4294967040 }
  0x46   :  { %736 = dma.done.wait [#allocation6], 2560  }
  0x47   :  { %737 = vsyncadd [#allocation6], 4294964736 }
  0x48   :  { %738 = dma.done.wait [#allocation9], 2048  }
  0x49   :  { %739 = vsyncadd [#allocation9], 4294965248  ;;  %vm95_vm0 = vcmask 261120   ;;  %v84_v0 = vld [vmem:[#allocation5] sm:$0xff]  ;;  %v85_v1 = vld [vmem:[#allocation5 + $0x8] sm:$0xff] }
  0x4a   :  { %v86_v2 = vld [vmem:[#allocation5 + $0x10] sm:$0xff]  ;;  %v541_v3 = vpack.c.bf16 %v85_v1, %v84_v0  ;;  %v87_v4 = vld [vmem:[#allocation5 + $0x18] sm:$0xff]  ;;  %v179_v7 = vld [vmem:[#allocation7] sm:$0xff] }
  0x4b   :  { %v82_v5 = vld [vmem:[#allocation2] sm:$0xff]  ;;  %v545_v6 = vpack.c.bf16 %v87_v4, %v86_v2  ;;  %v180_v8 = vld [vmem:[#allocation7 + $0x8] sm:$0xff]  ;;  %v182_v11 = vld [vmem:[#allocation7 + $0x18] sm:$0xff] }
  0x4c   :  { %468 = vmatprep.mubr.msk.f32.mxu0 %vm95_vm0, %v82_v5  ;;  %v181_v9 = vld [vmem:[#allocation7 + $0x10] sm:$0xff]  ;;  %542 = vmatprep.subr.bf16.mxu0 %v541_v3  ;;  %v549_v10 = vpack.c.bf16 %v180_v8, %v179_v7  ;;  %v183_v13 = vld [vmem:[#allocation7 + $0x20] sm:$0xff]  ;;  %v184_v14 = vld [vmem:[#allocation7 + $0x28] sm:$0xff] }
  0x4d   :  { %544 = vmatpush3.bf16.msra.mxu0 %v541_v3  ;;  %v553_v12 = vpack.c.bf16 %v182_v11, %v181_v9  ;;  %v557_v15 = vpack.c.bf16 %v184_v14, %v183_v13  ;;  %v83_v16 = vld [vmem:[#allocation2 + $0x8] sm:$0xff]  ;;  %v185_v17 = vld [vmem:[#allocation7 + $0x30] sm:$0xff]  ;;  %v187_v20 = vld [vmem:[#allocation7 + $0x40] sm:$0xff] }
  0x4e   :  { %546 = vmatprep.subr.bf16.mxu0 %v545_v6  ;;  %550 = vmatprep.subr.bf16.mxu1 %v549_v10  ;;  %v186_v18 = vld [vmem:[#allocation7 + $0x38] sm:$0xff]  ;;  %v188_v21 = vld [vmem:[#allocation7 + $0x48] sm:$0xff]  ;;  %v189_v23 = vld [vmem:[#allocation7 + $0x50] sm:$0xff] }
  0x4f   :  { %552 = vmatpush3.bf16.msra.mxu1 %v549_v10  ;;  %v561_v19 = vpack.c.bf16 %v186_v18, %v185_v17  ;;  %v565_v22 = vpack.c.bf16 %v188_v21, %v187_v20  ;;  %v190_v24 = vld [vmem:[#allocation7 + $0x58] sm:$0xff]  ;;  %v191_v26 = vld [vmem:[#allocation7 + $0x60] sm:$0xff]  ;;  %v192_v27 = vld [vmem:[#allocation7 + $0x68] sm:$0xff] }
  0x50   :  { %554 = vmatprep.subr.bf16.mxu1 %v553_v12  ;;  %v569_v25 = vpack.c.bf16 %v190_v24, %v189_v23  ;;  %v573_v28 = vpack.c.bf16 %v192_v27, %v191_v26  ;;  %v193_v29 = vld [vmem:[#allocation7 + $0x70] sm:$0xff]  ;;  %v194_v30 = vld [vmem:[#allocation7 + $0x78] sm:$0xff]  ;;  %v279_v32 = vld [vmem:[#allocation8] sm:$0xff] }
  0x51   :  { %548 = vmatpush3.bf16.msra.mxu0 %v545_v6  ;;  %v577_v31 = vpack.c.bf16 %v194_v30, %v193_v29  ;;  %v280_v33 = vld [vmem:[#allocation8 + $0x8] sm:$0xff]  ;;  %v281_v34 = vld [vmem:[#allocation8 + $0x10] sm:$0xff]  ;;  %v282_v36 = vld [vmem:[#allocation8 + $0x18] sm:$0xff]  ;;  %v377_v6 = vlaneseq }
  0x52   :  { %v581_v35 = vpack.c.bf16 %v280_v33, %v279_v32  ;;  %v585_v37 = vpack.c.bf16 %v282_v36, %v281_v34  ;;  %v283_v38 = vld [vmem:[#allocation8 + $0x20] sm:$0xff]  ;;  %v284_v39 = vld [vmem:[#allocation8 + $0x28] sm:$0xff]  ;;  %v285_v41 = vld [vmem:[#allocation8 + $0x30] sm:$0xff] }
  0x53   :  { %556 = vmatpush3.bf16.msra.mxu1 %v553_v12  ;;  %v589_v40 = vpack.c.bf16 %v284_v39, %v283_v38  ;;  %v286_v42 = vld [vmem:[#allocation8 + $0x38] sm:$0xff]  ;;  %v287_v44 = vld [vmem:[#allocation8 + $0x40] sm:$0xff]  ;;  %v288_v45 = vld [vmem:[#allocation8 + $0x48] sm:$0xff]  ;;  %v378_v7 = vand.u32 127, %v377_v6 }
  0x54   :  { %469 = vmatmul.mubr.msk.f32.vlgmr.msra.gmra.mrb[0].mxu0 %vm95_vm0, %v83_v16  ;;  %558 = vmatprep.subr.bf16.mxu1 %v557_v15  ;;  %v593_v43 = vpack.c.bf16 %v286_v42, %v285_v41  ;;  %v597_v46 = vpack.c.bf16 %v288_v45, %v287_v44  ;;  %v289_v47 = vld [vmem:[#allocation8 + $0x50] sm:$0xff]  ;;  %v290_v48 = vld [vmem:[#allocation8 + $0x58] sm:$0xff]  ;;  %v291_v50 = vld [vmem:[#allocation8 + $0x60] sm:$0xff] }
  0x55   :  { %582 = vmatprep.subr.bf16.mxu0 %v581_v35  ;;  %v601_v49 = vpack.c.bf16 %v290_v48, %v289_v47  ;;  %v292_v51 = vld [vmem:[#allocation8 + $0x68] sm:$0xff]  ;;  %v413_v53 = vld [vmem:[%s903_s2] ss:$0 sm:$0xff]  ;;  %v294_v61 = vld [vmem:[#allocation8 + $0x78] sm:$0xff]  ;;  %vm379_vm1 = vcmp.ge.s32.totalorder %v378_v7, 32  ;;  %vm380_vm2 = vcmp.lt.s32.totalorder %v378_v7, 48 }
  0x56   :  { %584 = vmatpush3.bf16.msra.mxu0 %v581_v35  ;;  %v605_v52 = vpack.c.bf16 %v292_v51, %v291_v50  ;;  %v293_v60 = vld [vmem:[#allocation8 + $0x70] sm:$0xff]  ;;  %vm874_vm3 = vmand %vm379_vm1, %vm380_vm2 }
  0x57   :  { %560 = vmatpush3.bf16.msra.mxu1 %v557_v15  ;;  %586 = vmatprep.subr.bf16.mxu0 %v585_v37  ;;  %v609_v62 = vpack.c.bf16 %v294_v61, %v293_v60  ;;  %v416_v63 = vld [vmem:[%s905_s4] ss:$0 sm:$0xff]  ;;  %s748_s4 = smov [#allocation10]  }
  0x58   :  { %562 = vmatprep.subr.bf16.mxu1 %v561_v19  ;;  %v417_v8 = vld [vmem:[%s907_s6] ss:$0 sm:$0xff]  ;;  %s399_s6 = sshll.u32 %s748_s4, 4  ;;  %s400_s6 = int_to_ptr.vmem [resolvable:$true] %s399_s6 }
  0x59   :  { %s712_s8 = scalar_lea.vmem %s400_s6, 256  ;;  %p717_p5 = scmp.lt.s32.totalorder %s400_s6, %s400_s6 }
  0x5a   :  { %588 = vmatpush3.bf16.msra.mxu0 %v585_v37  ;;  %p713_p4 = scmp.ne.s32.totalorder %s400_s6, %s712_s8  ;;  %p718_p6 = scmp.lt.s32.totalorder %s712_s8, %s712_s8 }
  0x5b   :  { %564 = vmatpush3.bf16.msra.mxu1 %v561_v19  ;;  %590 = vmatprep.subr.bf16.mxu0 %v589_v40 }
  0x5c   :  { %566 = vmatprep.subr.bf16.mxu1 %v565_v22  ;;  %p719_p7 = por %p718_p6, %p717_p5 }
  0x5e   :  { %592 = vmatpush3.bf16.msra.mxu0 %v589_v40  ;;  %p720_p8 = pnand %p719_p7, %p713_p4 }
  0x5f   :  { %568 = vmatpush3.bf16.msra.mxu1 %v565_v22  ;;  %594 = vmatprep.subr.bf16.mxu0 %v593_v43 }
  0x60   :  { %570 = vmatprep.subr.bf16.mxu1 %v569_v25 }
  0x62   :  { %596 = vmatpush3.bf16.msra.mxu0 %v593_v43 }
  0x63   :  { %572 = vmatpush3.bf16.msra.mxu1 %v569_v25  ;;  %598 = vmatprep.subr.bf16.mxu0 %v597_v46 }
  0x64   :  { %574 = vmatprep.subr.bf16.mxu1 %v573_v28 }
  0x66   :  { %600 = vmatpush3.bf16.msra.mxu0 %v597_v46 }
  0x67   :  { %576 = vmatpush3.bf16.msra.mxu1 %v573_v28  ;;  %602 = vmatprep.subr.bf16.mxu0 %v601_v49 }
  0x68   :  { %578 = vmatprep.subr.bf16.mxu1 %v577_v31 }
  0x6a   :  { %604 = vmatpush3.bf16.msra.mxu0 %v601_v49 }
  0x6b   :  { %580 = vmatpush3.bf16.msra.mxu1 %v577_v31  ;;  %606 = vmatprep.subr.bf16.mxu0 %v605_v52 }
  0x6e   :  { %608 = vmatpush3.bf16.msra.mxu0 %v605_v52 }
  0x6f   :  { %610 = vmatprep.subr.bf16.mxu0 %v609_v62 }
  0x72   :  { %612 = vmatpush3.bf16.msra.mxu0 %v609_v62 }
 0x127   :  { %v470_v54 = vpop.f32.mrb[0].mxu0 }
 0x128   :  { %v174_v55 = vadd.f32 %v470_v54, %v413_v53  ;;  %v168_v56 = vpop.f32.mrb[1].mxu0 }
 0x129   :  { %v169_v57 = vadd.f32 %v413_v53, %v168_v56 }
 0x12a   :  { %v178_v59 = vmax.f32 %v174_v55, 0.0 }
 0x12b   :  { %v177_v58 = vmax.f32 %v169_v57, 0.0 }
 0x12d   :  { %503 = vmatprep.mubr.f32.mxu1 %v177_v58 }
 0x12e   :  { %504 = vmatmul.mubr.f32.vlgmr.msra.gmra.mrb[0].mxu1 %v178_v59 }
 0x201   :  { %v505_v0 = vpop.f32.mrb[0].mxu1 }
 0x202   :  { %v274_v1 = vadd.f32 %v505_v0, %v416_v63  ;;  %v268_v2 = vpop.f32.mrb[1].mxu1 }
 0x203   :  { %v269_v3 = vadd.f32 %v416_v63, %v268_v2 }
 0x204   :  { %v278_v5 = vmax.f32 %v274_v1, 0.0 }
 0x205   :  { %v277_v4 = vmax.f32 %v269_v3, 0.0 }
 0x207   :  { %538 = vmatprep.mubr.f32.mxu0 %v277_v4 }
 0x208   :  { %539 = vmatmul.mubr.f32.vlgmr.msra.gmra.mrb[2].mxu0 %v278_v5 }
 0x2db   :  { %v540_v9 = vpop.f32.mrb[2].mxu0 }
 0x2dc   :  { %v374_v10 = vadd.f32 %v540_v9, %v417_v8  ;;  %v368_v11 = vpop.f32.mrb[3].mxu0 }
 0x2dd   :  { %v369_v13 = vadd.f32 %v417_v8, %v368_v11 }
 0x2de   :  { %v383_v14 = vmul.f32 0.5, %v374_v10 }
 0x2df   :  { %v382_v15 = vmul.f32 0.5, %v369_v13 }
 0x2e0   :  { %v385_v16 = vsel %vm874_vm3, %v383_v14, 0.0 }
 0x2e1   :  { %v388_v17 = vmul.f32 1.442695, %v385_v16  ;;  %v384_v18 = vsel %vm874_vm3, %v382_v15, 0.0 }
 0x2e2   :  { %v386_v19 = vmul.f32 1.442695, %v384_v18 }
 0x2e3   :  { %620 = vpow2.f32 %v388_v17 }
 0x2e4   :  { %622 = vpow2.f32 %v386_v19 }
 0x2ed   :  { %v621_v20 = vpop.eup %620 }
 0x2ee   :  { %v623_v21 = vpop.eup %622  ;;  %v391_v22 = vsel %vm874_vm3, %v621_v20, %v374_v10 }
 0x2ef   :  { %v390_v23 = vsel %vm874_vm3, %v623_v21, %v369_v13  ;;  %393 = vst [vmem:[#allocation10 + $0x8] sm:$0xff] %v391_v22 }
 0x2f0   :  { %392 = vst [vmem:[#allocation10] sm:$0xff] %v390_v23 }
 0x2f1   :  { %723 = shalt.err (!%p720_p8)
}
 0x2f2   :  { %s724_s11 = scalar_lea.hbm %s908_s7, 256 }
 0x2f3   :  { %p725_p9 = scmp.ne.s32.totalorder %s908_s7, %s724_s11  ;;  %p728_p10 = scmp.lt.u32.totalorder %s724_s11, %s908_s7 }
 0x2f5   :  { %p730_p11 = pnand %p728_p10, %p725_p9 }
 0x2f7   :  { %733 = shalt.err (!%p730_p11)
}
 0x2f8   :  { %405 = dma.vmem_to_hbm [thread:$0]  %s400_s6, 256, %s908_s7, [#allocation4], %s744_s13, %s744_s13, %s745_s14  }
 0x2f9   :  { %740 = dma.done.wait [#allocation4], 256  }
 0x2fa   :  { %741 = vsyncadd [#allocation4], 4294967040 }
 0x2fb   :  { %409 = vsyncpa [#allocation3], 1 }
 0x2fc   :  { %410 = vsyncpa [#allocation6], 1 }
 0x2fd   :  { %411 = vsyncpa [#allocation9], 1 }
 0x2fe   :  { %412 = vsyncpa [#allocation4], 1 }

// kernel: tpu_custom_call.1
= control target key start
LH: loop header
LB: loop body
LE: loop exit
PB: predicated region body
PF: predicated region fallthrough
CT: control target
= control target key end

     0   :  { %12 = vsyncpa [#allocation3], 0  ;;  %s901_s0 = inlined_call_operand.hbm [shape: f32[16,32], index: 0, kind: input, shape index: {}]   ;;  %s902_s1 = inlined_call_operand.hbm [shape: f32[32,128], index: 1, kind: input, shape index: {}]   ;;  %s903_s2 = inlined_call_operand.vmem [shape: f32[1,128], index: 2, kind: input, shape index: {}]   ;;  %s904_s3 = inlined_call_operand.hbm [shape: f32[128,128], index: 3, kind: input, shape index: {}]   ;;  %s905_s4 = inlined_call_operand.vmem [shape: f32[1,128], index: 4, kind: input, shape index: {}]   ;;  %s906_s5 = inlined_call_operand.hbm [shape: f32[128,128], index: 5, kind: input, shape index: {}]   ;;  %s907_s6 = inlined_call_operand.vmem [shape: f32[1,128], index: 6, kind: input, shape index: {}]   ;;  %s908_s7 = inlined_call_operand.hbm [shape: f32[16,128], index: 7, kind: output, shape index: {}]  }
   0x1   :  { %13 = vsyncpa [#allocation6], 0 }
   0x2   :  { %14 = vsyncpa [#allocation9], 0 }
   0x3   :  { %15 = vsyncpa [#allocation4], 0  ;;  %s742_s24 = smov [#allocation5]   ;;  %s743_s26 = smov [#allocation2]  }
   0x4   :  { %s33_s25 = sshll.u32 %s742_s24, 4  ;;  %s21_s27 = sshll.u32 %s743_s26, 4  ;;  %s34_s25 = int_to_ptr.vmem [resolvable:$true] %s33_s25  ;;  %s789_s27 = int_to_ptr.vmem [resolvable:$true] %s21_s27 }
   0x5   :  { %s624_s30 = scalar_lea.hbm %s902_s1, 512 }
   0x6   :  { %p625_p0 = scmp.ne.s32.totalorder %s902_s1, %s624_s30  ;;  %p628_p1 = scmp.lt.u32.totalorder %s624_s30, %s902_s1 }
   0x8   :  { %p630_p2 = pnand %p628_p1, %p625_p0 }
   0xa   :  { %633 = shalt.err (!%p630_p2)
}
   0xb   :  { %s634_s12 = scalar_lea.vmem %s34_s25, 512  ;;  %p639_p4 = scmp.lt.s32.totalorder %s34_s25, %s34_s25 }
   0xc   :  { %p635_p3 = scmp.ne.s32.totalorder %s34_s25, %s634_s12  ;;  %p640_p5 = scmp.lt.s32.totalorder %s634_s12, %s634_s12 }
   0xe   :  { %p641_p6 = por %p640_p5, %p639_p4 }
  0x10   :  { %p642_p7 = pnand %p641_p6, %p635_p3 }
  0x12   :  { %645 = shalt.err (!%p642_p7)
}
  0x13   :  { %s744_s13 = smov 128   ;;  %s745_s14 = smov 8  }
  0x14   :  { %39 = dma.hbm_to_vmem [thread:$0]  %s902_s1, 512, %s34_s25, [#allocation6], %s744_s13, %s744_s13, %s745_s14  }
  0x15   :  { %s646_s19 = scalar_lea.hbm %s901_s0, 256 }
  0x16   :  { %p647_p8 = scmp.ne.s32.totalorder %s901_s0, %s646_s19  ;;  %p650_p9 = scmp.lt.u32.totalorder %s646_s19, %s901_s0 }
  0x18   :  { %p652_p10 = pnand %p650_p9, %p647_p8 }
  0x1a   :  { %655 = shalt.err (!%p652_p10)
}
  0x1b   :  { %s656_s24 = scalar_lea.vmem %s789_s27, 256  ;;  %p661_p12 = scmp.lt.s32.totalorder %s789_s27, %s789_s27 }
  0x1c   :  { %p657_p11 = scmp.ne.s32.totalorder %s789_s27, %s656_s24  ;;  %p662_p13 = scmp.lt.s32.totalorder %s656_s24, %s656_s24 }
  0x1e   :  { %p663_p0 = por %p662_p13, %p661_p12 }
  0x20   :  { %p664_p1 = pnand %p663_p0, %p657_p11 }
  0x22   :  { %667 = shalt.err (!%p664_p1)
}
  0x23   :  { %27 = dma.hbm_to_vmem [thread:$0]  %s901_s0, 256, %s789_s27, [#allocation3], %s744_s13, %s744_s13, %s745_s14  }
  0x24   :  { %s746_s26 = smov [#allocation7]   ;;  %s747_s29 = smov [#allocation8]  }
  0x25   :  { %s47_s28 = sshll.u32 %s746_s26, 4  ;;  %s61_s30 = sshll.u32 %s747_s29, 4  ;;  %s48_s28 = int_to_ptr.vmem [resolvable:$true] %s47_s28  ;;  %s826_s30 = int_to_ptr.vmem [resolvable:$true] %s61_s30 }
  0x26   :  { %s668_s10 = scalar_lea.hbm %s904_s3, 2048 }
  0x27   :  { %p669_p2 = scmp.ne.s32.totalorder %s904_s3, %s668_s10  ;;  %p672_p3 = scmp.lt.u32.totalorder %s668_s10, %s904_s3 }
  0x29   :  { %p674_p4 = pnand %p672_p3, %p669_p2 }
  0x2b   :  { %677 = shalt.err (!%p674_p4)
}
  0x2c   :  { %s678_s0 = scalar_lea.vmem %s48_s28, 2048  ;;  %p683_p6 = scmp.lt.s32.totalorder %s48_s28, %s48_s28 }
  0x2d   :  { %p679_p5 = scmp.ne.s32.totalorder %s48_s28, %s678_s0  ;;  %p684_p7 = scmp.lt.s32.totalorder %s678_s0, %s678_s0 }
  0x2f   :  { %p685_p8 = por %p684_p7, %p683_p6 }
  0x31   :  { %p686_p9 = pnand %p685_p8, %p679_p5 }
  0x33   :  { %689 = shalt.err (!%p686_p9)
}
  0x34   :  { %53 = dma.hbm_to_vmem [thread:$0]  %s904_s3, 2048, %s48_s28, [#allocation6], %s744_s13, %s744_s13, %s745_s14  }
  0x35   :  { %s690_s20 = scalar_lea.hbm %s906_s5, 2048 }
  0x36   :  { %p691_p10 = scmp.ne.s32.totalorder %s906_s5, %s690_s20  ;;  %p694_p11 = scmp.lt.u32.totalorder %s690_s20, %s906_s5 }
  0x38   :  { %p696_p12 = pnand %p694_p11, %p691_p10 }
  0x3a   :  { %699 = shalt.err (!%p696_p12)
}
  0x3b   :  { %s700_s1 = scalar_lea.vmem %s826_s30, 2048  ;;  %p705_p0 = scmp.lt.s32.totalorder %s826_s30, %s826_s30 }
  0x3c   :  { %p701_p13 = scmp.ne.s32.totalorder %s826_s30, %s700_s1  ;;  %p706_p1 = scmp.lt.s32.totalorder %s700_s1, %s700_s1 }
  0x3e   :  { %p707_p2 = por %p706_p1, %p705_p0 }
  0x40   :  { %p708_p3 = pnand %p707_p2, %p701_p13 }
  0x42   :  { %711 = shalt.err (!%p708_p3)
}
  0x43   :  { %67 = dma.hbm_to_vmem [thread:$0]  %s906_s5, 2048, %s826_s30, [#allocation9], %s744_s13, %s744_s13, %s745_s14  }
  0x44   :  { %734 = dma.done.wait [#allocation3], 256  }
  0x45   :  { %735 = vsyncadd [#allocation3], 4294967040 }
  0x46   :  { %736 = dma.done.wait [#allocation6], 2560  }
  0x47   :  { %737 = vsyncadd [#allocation6], 4294964736 }
  0x48   :  { %738 = dma.done.wait [#allocation9], 2048  }
  0x49   :  { %739 = vsyncadd [#allocation9], 4294965248  ;;  %vm95_vm0 = vcmask 261120   ;;  %v84_v0 = vld [vmem:[#allocation5] sm:$0xff]  ;;  %v85_v1 = vld [vmem:[#allocation5 + $0x8] sm:$0xff] }
  0x4a   :  { %v86_v2 = vld [vmem:[#allocation5 + $0x10] sm:$0xff]  ;;  %v541_v3 = vpack.c.bf16 %v85_v1, %v84_v0  ;;  %v87_v4 = vld [vmem:[#allocation5 + $0x18] sm:$0xff]  ;;  %v179_v7 = vld [vmem:[#allocation7] sm:$0xff] }
  0x4b   :  { %v82_v5 = vld [vmem:[#allocation2] sm:$0xff]  ;;  %v545_v6 = vpack.c.bf16 %v87_v4, %v86_v2  ;;  %v180_v8 = vld [vmem:[#allocation7 + $0x8] sm:$0xff]  ;;  %v182_v11 = vld [vmem:[#allocation7 + $0x18] sm:$0xff] }
  0x4c   :  { %468 = vmatprep.mubr.msk.f32.mxu0 %vm95_vm0, %v82_v5  ;;  %v181_v9 = vld [vmem:[#allocation7 + $0x10] sm:$0xff]  ;;  %542 = vmatprep.subr.bf16.mxu0 %v541_v3  ;;  %v549_v10 = vpack.c.bf16 %v180_v8, %v179_v7  ;;  %v183_v13 = vld [vmem:[#allocation7 + $0x20] sm:$0xff]  ;;  %v184_v14 = vld [vmem:[#allocation7 + $0x28] sm:$0xff] }
  0x4d   :  { %544 = vmatpush3.bf16.msra.mxu0 %v541_v3  ;;  %v553_v12 = vpack.c.bf16 %v182_v11, %v181_v9  ;;  %v557_v15 = vpack.c.bf16 %v184_v14, %v183_v13  ;;  %v83_v16 = vld [vmem:[#allocation2 + $0x8] sm:$0xff]  ;;  %v185_v17 = vld [vmem:[#allocation7 + $0x30] sm:$0xff]  ;;  %v187_v20 = vld [vmem:[#allocation7 + $0x40] sm:$0xff] }
  0x4e   :  { %546 = vmatprep.subr.bf16.mxu0 %v545_v6  ;;  %550 = vmatprep.subr.bf16.mxu1 %v549_v10  ;;  %v186_v18 = vld [vmem:[#allocation7 + $0x38] sm:$0xff]  ;;  %v188_v21 = vld [vmem:[#allocation7 + $0x48] sm:$0xff]  ;;  %v189_v23 = vld [vmem:[#allocation7 + $0x50] sm:$0xff] }
  0x4f   :  { %552 = vmatpush3.bf16.msra.mxu1 %v549_v10  ;;  %v561_v19 = vpack.c.bf16 %v186_v18, %v185_v17  ;;  %v565_v22 = vpack.c.bf16 %v188_v21, %v187_v20  ;;  %v190_v24 = vld [vmem:[#allocation7 + $0x58] sm:$0xff]  ;;  %v191_v26 = vld [vmem:[#allocation7 + $0x60] sm:$0xff]  ;;  %v192_v27 = vld [vmem:[#allocation7 + $0x68] sm:$0xff] }
  0x50   :  { %554 = vmatprep.subr.bf16.mxu1 %v553_v12  ;;  %v569_v25 = vpack.c.bf16 %v190_v24, %v189_v23  ;;  %v573_v28 = vpack.c.bf16 %v192_v27, %v191_v26  ;;  %v193_v29 = vld [vmem:[#allocation7 + $0x70] sm:$0xff]  ;;  %v194_v30 = vld [vmem:[#allocation7 + $0x78] sm:$0xff]  ;;  %v279_v32 = vld [vmem:[#allocation8] sm:$0xff] }
  0x51   :  { %548 = vmatpush3.bf16.msra.mxu0 %v545_v6  ;;  %v577_v31 = vpack.c.bf16 %v194_v30, %v193_v29  ;;  %v280_v33 = vld [vmem:[#allocation8 + $0x8] sm:$0xff]  ;;  %v281_v34 = vld [vmem:[#allocation8 + $0x10] sm:$0xff]  ;;  %v282_v36 = vld [vmem:[#allocation8 + $0x18] sm:$0xff]  ;;  %v377_v6 = vlaneseq }
  0x52   :  { %v581_v35 = vpack.c.bf16 %v280_v33, %v279_v32  ;;  %v585_v37 = vpack.c.bf16 %v282_v36, %v281_v34  ;;  %v283_v38 = vld [vmem:[#allocation8 + $0x20] sm:$0xff]  ;;  %v284_v39 = vld [vmem:[#allocation8 + $0x28] sm:$0xff]  ;;  %v285_v41 = vld [vmem:[#allocation8 + $0x30] sm:$0xff] }
  0x53   :  { %556 = vmatpush3.bf16.msra.mxu1 %v553_v12  ;;  %v589_v40 = vpack.c.bf16 %v284_v39, %v283_v38  ;;  %v286_v42 = vld [vmem:[#allocation8 + $0x38] sm:$0xff]  ;;  %v287_v44 = vld [vmem:[#allocation8 + $0x40] sm:$0xff]  ;;  %v288_v45 = vld [vmem:[#allocation8 + $0x48] sm:$0xff]  ;;  %v378_v7 = vand.u32 127, %v377_v6 }
  0x54   :  { %469 = vmatmul.mubr.msk.f32.vlgmr.msra.gmra.mrb[0].mxu0 %vm95_vm0, %v83_v16  ;;  %558 = vmatprep.subr.bf16.mxu1 %v557_v15  ;;  %v593_v43 = vpack.c.bf16 %v286_v42, %v285_v41  ;;  %v597_v46 = vpack.c.bf16 %v288_v45, %v287_v44  ;;  %v289_v47 = vld [vmem:[#allocation8 + $0x50] sm:$0xff]  ;;  %v290_v48 = vld [vmem:[#allocation8 + $0x58] sm:$0xff]  ;;  %v291_v50 = vld [vmem:[#allocation8 + $0x60] sm:$0xff] }
  0x55   :  { %582 = vmatprep.subr.bf16.mxu0 %v581_v35  ;;  %v601_v49 = vpack.c.bf16 %v290_v48, %v289_v47  ;;  %v292_v51 = vld [vmem:[#allocation8 + $0x68] sm:$0xff]  ;;  %v413_v53 = vld [vmem:[%s903_s2] ss:$0 sm:$0xff]  ;;  %v294_v61 = vld [vmem:[#allocation8 + $0x78] sm:$0xff]  ;;  %vm379_vm1 = vcmp.ge.s32.totalorder %v378_v7, 32  ;;  %vm380_vm2 = vcmp.lt.s32.totalorder %v378_v7, 48 }
  0x56   :  { %584 = vmatpush3.bf16.msra.mxu0 %v581_v35  ;;  %v605_v52 = vpack.c.bf16 %v292_v51, %v291_v50  ;;  %v293_v60 = vld [vmem:[#allocation8 + $0x70] sm:$0xff]  ;;  %vm874_vm3 = vmand %vm379_vm1, %vm380_vm2 }
  0x57   :  { %560 = vmatpush3.bf16.msra.mxu1 %v557_v15  ;;  %586 = vmatprep.subr.bf16.mxu0 %v585_v37  ;;  %v609_v62 = vpack.c.bf16 %v294_v61, %v293_v60  ;;  %v416_v63 = vld [vmem:[%s905_s4] ss:$0 sm:$0xff]  ;;  %s748_s4 = smov [#allocation10]  }
  0x58   :  { %562 = vmatprep.subr.bf16.mxu1 %v561_v19  ;;  %v417_v8 = vld [vmem:[%s907_s6] ss:$0 sm:$0xff]  ;;  %s399_s6 = sshll.u32 %s748_s4, 4  ;;  %s400_s6 = int_to_ptr.vmem [resolvable:$true] %s399_s6 }
  0x59   :  { %s712_s8 = scalar_lea.vmem %s400_s6, 256  ;;  %p717_p5 = scmp.lt.s32.totalorder %s400_s6, %s400_s6 }
  0x5a   :  { %588 = vmatpush3.bf16.msra.mxu0 %v585_v37  ;;  %p713_p4 = scmp.ne.s32.totalorder %s400_s6, %s712_s8  ;;  %p718_p6 = scmp.lt.s32.totalorder %s712_s8, %s712_s8 }
  0x5b   :  { %564 = vmatpush3.bf16.msra.mxu1 %v561_v19  ;;  %590 = vmatprep.subr.bf16.mxu0 %v589_v40 }
  0x5c   :  { %566 = vmatprep.subr.bf16.mxu1 %v565_v22  ;;  %p719_p7 = por %p718_p6, %p717_p5 }
  0x5e   :  { %592 = vmatpush3.bf16.msra.mxu0 %v589_v40  ;;  %p720_p8 = pnand %p719_p7, %p713_p4 }
  0x5f   :  { %568 = vmatpush3.bf16.msra.mxu1 %v565_v22  ;;  %594 = vmatprep.subr.bf16.mxu0 %v593_v43 }
  0x60   :  { %570 = vmatprep.subr.bf16.mxu1 %v569_v25 }
  0x62   :  { %596 = vmatpush3.bf16.msra.mxu0 %v593_v43 }
  0x63   :  { %572 = vmatpush3.bf16.msra.mxu1 %v569_v25  ;;  %598 = vmatprep.subr.bf16.mxu0 %v597_v46 }
  0x64   :  { %574 = vmatprep.subr.bf16.mxu1 %v573_v28 }
  0x66   :  { %600 = vmatpush3.bf16.msra.mxu0 %v597_v46 }
  0x67   :  { %576 = vmatpush3.bf16.msra.mxu1 %v573_v28  ;;  %602 = vmatprep.subr.bf16.mxu0 %v601_v49 }
  0x68   :  { %578 = vmatprep.subr.bf16.mxu1 %v577_v31 }
  0x6a   :  { %604 = vmatpush3.bf16.msra.mxu0 %v601_v49 }
  0x6b   :  { %580 = vmatpush3.bf16.msra.mxu1 %v577_v31  ;;  %606 = vmatprep.subr.bf16.mxu0 %v605_v52 }
  0x6e   :  { %608 = vmatpush3.bf16.msra.mxu0 %v605_v52 }
  0x6f   :  { %610 = vmatprep.subr.bf16.mxu0 %v609_v62 }
  0x72   :  { %612 = vmatpush3.bf16.msra.mxu0 %v609_v62 }
 0x127   :  { %v470_v54 = vpop.f32.mrb[0].mxu0 }
 0x128   :  { %v174_v55 = vadd.f32 %v470_v54, %v413_v53  ;;  %v168_v56 = vpop.f32.mrb[1].mxu0 }
 0x129   :  { %v169_v57 = vadd.f32 %v413_v53, %v168_v56 }
 0x12a   :  { %v178_v59 = vmax.f32 %v174_v55, 0.0 }
 0x12b   :  { %v177_v58 = vmax.f32 %v169_v57, 0.0 }
 0x12d   :  { %503 = vmatprep.mubr.f32.mxu1 %v177_v58 }
 0x12e   :  { %504 = vmatmul.mubr.f32.vlgmr.msra.gmra.mrb[0].mxu1 %v178_v59 }
 0x201   :  { %v505_v0 = vpop.f32.mrb[0].mxu1 }
 0x202   :  { %v274_v1 = vadd.f32 %v505_v0, %v416_v63  ;;  %v268_v2 = vpop.f32.mrb[1].mxu1 }
 0x203   :  { %v269_v3 = vadd.f32 %v416_v63, %v268_v2 }
 0x204   :  { %v278_v5 = vmax.f32 %v274_v1, 0.0 }
 0x205   :  { %v277_v4 = vmax.f32 %v269_v3, 0.0 }
 0x207   :  { %538 = vmatprep.mubr.f32.mxu0 %v277_v4 }
 0x208   :  { %539 = vmatmul.mubr.f32.vlgmr.msra.gmra.mrb[2].mxu0 %v278_v5 }
 0x2db   :  { %v540_v9 = vpop.f32.mrb[2].mxu0 }
 0x2dc   :  { %v374_v10 = vadd.f32 %v540_v9, %v417_v8  ;;  %v368_v11 = vpop.f32.mrb[3].mxu0 }
 0x2dd   :  { %v369_v13 = vadd.f32 %v417_v8, %v368_v11 }
 0x2de   :  { %v383_v14 = vmul.f32 0.5, %v374_v10 }
 0x2df   :  { %v382_v15 = vmul.f32 0.5, %v369_v13 }
 0x2e0   :  { %v385_v16 = vsel %vm874_vm3, %v383_v14, 0.0 }
 0x2e1   :  { %v388_v17 = vmul.f32 1.442695, %v385_v16  ;;  %v384_v18 = vsel %vm874_vm3, %v382_v15, 0.0 }
 0x2e2   :  { %v386_v19 = vmul.f32 1.442695, %v384_v18 }
 0x2e3   :  { %620 = vpow2.f32 %v388_v17 }
 0x2e4   :  { %622 = vpow2.f32 %v386_v19 }
 0x2ed   :  { %v621_v20 = vpop.eup %620 }
 0x2ee   :  { %v623_v21 = vpop.eup %622  ;;  %v391_v22 = vsel %vm874_vm3, %v621_v20, %v374_v10 }
 0x2ef   :  { %v390_v23 = vsel %vm874_vm3, %v623_v21, %v369_v13  ;;  %393 = vst [vmem:[#allocation10 + $0x8] sm:$0xff] %v391_v22 }
 0x2f0   :  { %392 = vst [vmem:[#allocation10] sm:$0xff] %v390_v23 }
 0x2f1   :  { %723 = shalt.err (!%p720_p8)
}
 0x2f2   :  { %s724_s11 = scalar_lea.hbm %s908_s7, 256 }
 0x2f3   :  { %p725_p9 = scmp.ne.s32.totalorder %s908_s7, %s724_s11  ;;  %p728_p10 = scmp.lt.u32.totalorder %s724_s11, %s908_s7 }
 0x2f5   :  { %p730_p11 = pnand %p728_p10, %p725_p9 }
 0x2f7   :  { %733 = shalt.err (!%p730_p11)
}
 0x2f8   :  { %405 = dma.vmem_to_hbm [thread:$0]  %s400_s6, 256, %s908_s7, [#allocation4], %s744_s13, %s744_s13, %s745_s14  }
 0x2f9   :  { %740 = dma.done.wait [#allocation4], 256  }
 0x2fa   :  { %741 = vsyncadd [#allocation4], 4294967040 }
 0x2fb   :  { %409 = vsyncpa [#allocation3], 1 }
 0x2fc   :  { %410 = vsyncpa [#allocation6], 1 }
 0x2fd   :  { %411 = vsyncpa [#allocation9], 1 }
 0x2fe   :  { %412 = vsyncpa [#allocation4], 1 }

</bundles_post_ra>
